<compile_context>
chip_gen: v6e
topology: v6e:2x2x1
jax: 0.10.0
libtpu: 0.0.40
codegen_flags: <defaults>
</compile_context>

<pallas_src>
import jax
import jax.numpy as jnp
from jax.experimental import pallas as pl
from jax.experimental.pallas import tpu as pltpu


def _largest_divisor_leq(n, m):
    """Largest divisor of n that is <= m (and >= 1)."""
    m = max(1, min(n, m))
    for d in range(m, 0, -1):
        if n % d == 0:
            return d
    return 1


def _pool_conv_kernel(x_ref, w_ref, o_ref):
    # x_ref: (bn, C, S)   pooled activations for bn whole images (S = Ho*Wo on the lane axis)
    # w_ref: (Co, C)      1x1-conv weight, resident across all grid steps
    # o_ref: (bn, Co, S)
    w = w_ref[...]
    for b in range(x_ref.shape[0]):           # static unroll: one plain 2-D MXU matmul per image
        o_ref[b] = jnp.dot(
            w, x_ref[b], preferred_element_type=jnp.float32
        ).astype(o_ref.dtype)


def downsample(x, weight, *, block_bytes=12 * 1024 * 1024):
    """DownSample forward.

    x:      (N, C, H, W)  float32
    weight: (Co, C)       float32 (1x1 conv, bias=False)
    returns (N, Co, ceil(H/2), ceil(W/2))
    """
    N, C, H, W = x.shape
    Co = weight.shape[0]
    Ho = -(-H // 2)                    # ceil_mode=True
    Wo = -(-W // 2)
    S = Ho * Wo
    itemsize = jnp.dtype(x.dtype).itemsize

    # ---- fused elementwise prologue: pad + 2x2 window sum + count_include_pad divisor ----
    # (no transpose; reads x once, writes a quarter-size pooled map in native NCHW order;
    #  allow_input_fusion below lets XLA fold this straight into the kernel's input DMA)
    xp = jnp.pad(x, ((0, 0), (0, 0), (0, 2 * Ho - H), (0, 2 * Wo - W)))
    s = (xp[:, :, 0::2, 0::2] + xp[:, :, 0::2, 1::2]
         + xp[:, :, 1::2, 0::2] + xp[:, :, 1::2, 1::2])
    cnt_h = jnp.where(jnp.arange(Ho) * 2 + 1 < H, 2.0, 1.0)     # valid rows per window
    cnt_w = jnp.where(jnp.arange(Wo) * 2 + 1 < W, 2.0, 1.0)     # valid cols per window
    inv = (1.0 / (cnt_h[:, None] * cnt_w[None, :])).astype(x.dtype)
    pooled = (s * inv[None, None]).reshape(N, C, S)             # free reshape (contiguous)

    # ---- block size: as many whole images per grid step as fit the VMEM budget ------------
    per_image = (C + Co) * S * itemsize                         # in + out bytes per image
    bn = _largest_divisor_leq(N, max(1, block_bytes // max(per_image, 1)))
    grid = (N // bn,)

    out = pl.pallas_call(
        _pool_conv_kernel,
        out_shape=jax.ShapeDtypeStruct((N, Co, S), x.dtype),
        grid_spec=pltpu.PrefetchScalarGridSpec(
            num_scalar_prefetch=0,
            grid=grid,
            in_specs=[
                pl.BlockSpec((bn, C, S), lambda i: (i, 0, 0)),   # pooled activations
                pl.BlockSpec((Co, C), lambda i: (0, 0)),         # weight stays resident
            ],
            out_specs=pl.BlockSpec((bn, Co, S), lambda i: (i, 0, 0)),
        ),
        compiler_params=pltpu.CompilerParams(
            dimension_semantics=("parallel",),     # shards image blocks across v7x's 2 TCs
            vmem_limit_bytes=48 * 1024 * 1024,     # ~2x block budget live; headroom on v7x 64MiB
            allow_input_fusion=[True, False],      # let XLA fuse the pooling prologue in
        ),
        cost_estimate=pl.CostEstimate(
            flops=2 * N * Co * C * S,
            transcendentals=0,
            bytes_accessed=(N * C * S + N * Co * S + Co * C) * itemsize,
        ),
    )(pooled, weight.astype(x.dtype))

    # free: splits the contiguous trailing dim, no transpose / copy
    return out.reshape(N, Co, Ho, Wo)


def _reference(x, weight):
    """Pure-JAX reference: AvgPool2d(2, ceil_mode=True, count_include_pad=False) + 1x1 conv."""
    N, C, H, W = x.shape
    Ho, Wo = -(-H // 2), -(-W // 2)
    xp = jnp.pad(x, ((0, 0), (0, 0), (0, 2 * Ho - H), (0, 2 * Wo - W)))
    s = (xp[:, :, 0::2, 0::2] + xp[:, :, 0::2, 1::2]
         + xp[:, :, 1::2, 0::2] + xp[:, :, 1::2, 1::2])
    cnt_h = jnp.where(jnp.arange(Ho) * 2 + 1 < H, 2.0, 1.0)
    cnt_w = jnp.where(jnp.arange(Wo) * 2 + 1 < W, 2.0, 1.0)
    pooled = s / (cnt_h[None, None, :, None] * cnt_w[None, None, None, :])
    return jnp.einsum("oc,nchw->nohw", weight, pooled)


if __name__ == "__main__":
    # DownSample(in_channels=4, chan_factor=2) -> out_channels = int(4*2) = 8, bias=False
    N, C = 2, 4
    chan_factor = 2
    Co = int(C * chan_factor)

    key = jax.random.PRNGKey(0)
    kx, kw, kx2 = jax.random.split(key, 3)
    weight = jax.random.normal(kw, (Co, C), dtype=jnp.float32) * 0.1

    down = jax.jit(downsample)

    # even spatial dims
    H, W = 16, 16
    x = jax.random.normal(kx, (N, C, H, W), dtype=jnp.float32)
    out = jax.block_until_ready(down(x, weight))
    ref = _reference(x, weight)
    assert out.shape == (N, Co, 8, 8), out.shape
    assert jnp.allclose(out, ref, atol=1e-5, rtol=1e-5), float(jnp.max(jnp.abs(out - ref)))

    # odd spatial dims: exercises ceil_mode=True overhang + count_include_pad=False divisor
    H2, W2 = 15, 13
    x2 = jax.random.normal(kx2, (N, C, H2, W2), dtype=jnp.float32)
    out2 = jax.block_until_ready(down(x2, weight))
    ref2 = _reference(x2, weight)
    assert out2.shape == (N, Co, 8, 7), out2.shape
    assert jnp.allclose(out2, ref2, atol=1e-5, rtol=1e-5), float(jnp.max(jnp.abs(out2 - ref2)))

    print("KERNEL_OK")
</pallas_src>

<mosaic_0001>
module attributes {stable_mosaic.version = 11 : i64} {
  func.func @_pool_conv_kernel(%arg0: i32, %arg1: memref<2x4x64xf32, #tpu.memory_space<vmem>>, %arg2: memref<8x4xf32, #tpu.memory_space<vmem>>, %arg3: memref<2x8x64xf32, #tpu.memory_space<vmem>>) attributes {dimension_semantics = [#tpu.dimension_semantics<parallel>], iteration_bounds = array<i64: 1>, scalar_prefetch = 0 : i64, scratch_operands = 0 : i64, tpu.core_type = #tpu.core_type<tc>, window_params = [{transform_indices = @transform_0, window_bounds = array<i64: 2, 4, 64>}, {pipeline_mode = #tpu.pipeline_mode<synchronous>, transform_indices = @transform_1, window_bounds = array<i64: 8, 4>}, {transform_indices = @transform_2, window_bounds = array<i64: 2, 8, 64>}]} {
    %c0 = arith.constant 0 : index
    %c0_0 = arith.constant 0 : index
    %0 = vector.load %arg2[%c0, %c0_0] : memref<8x4xf32, #tpu.memory_space<vmem>>, vector<8x4xf32>
    %c0_1 = arith.constant 0 : index
    %c0_2 = arith.constant 0 : index
    %c0_3 = arith.constant 0 : index
    %1 = vector.load %arg1[%c0_1, %c0_2, %c0_3] : memref<2x4x64xf32, #tpu.memory_space<vmem>>, vector<1x4x64xf32>
    %2 = vector.shape_cast %1 : vector<1x4x64xf32> to vector<4x64xf32>
    %cst = arith.constant dense<0.000000e+00> : vector<8x64xf32>
    %3 = tpu.matmul %0, %2, %cst {dimension_numbers = #tpu.dot_dimension_numbers<[1], [0], [0], [1], [0, 0, 1, 1], [], []>} : vector<8x4xf32>, vector<4x64xf32>, vector<8x64xf32> -> vector<8x64xf32>
    %c0_4 = arith.constant 0 : index
    %c0_5 = arith.constant 0 : index
    %c0_6 = arith.constant 0 : index
    %4 = vector.load %arg3[%c0_4, %c0_5, %c0_6] : memref<2x8x64xf32, #tpu.memory_space<vmem>>, vector<1x8x64xf32>
    %5 = vector.shape_cast %4 : vector<1x8x64xf32> to vector<8x64xf32>
    %6 = vector.shape_cast %3 : vector<8x64xf32> to vector<1x8x64xf32>
    tpu.vector_store %arg3[%c0_4, %c0_5, %c0_6], %6 {strides = array<i32>} : memref<2x8x64xf32, #tpu.memory_space<vmem>>, vector<1x8x64xf32>,
    %c1 = arith.constant 1 : index
    %c0_7 = arith.constant 0 : index
    %c0_8 = arith.constant 0 : index
    %7 = vector.load %arg1[%c1, %c0_7, %c0_8] : memref<2x4x64xf32, #tpu.memory_space<vmem>>, vector<1x4x64xf32>
    %8 = vector.shape_cast %7 : vector<1x4x64xf32> to vector<4x64xf32>
    %cst_9 = arith.constant dense<0.000000e+00> : vector<8x64xf32>
    %9 = tpu.matmul %0, %8, %cst_9 {dimension_numbers = #tpu.dot_dimension_numbers<[1], [0], [0], [1], [0, 0, 1, 1], [], []>} : vector<8x4xf32>, vector<4x64xf32>, vector<8x64xf32> -> vector<8x64xf32>
    %c1_10 = arith.constant 1 : index
    %c0_11 = arith.constant 0 : index
    %c0_12 = arith.constant 0 : index
    %10 = vector.load %arg3[%c1_10, %c0_11, %c0_12] : memref<2x8x64xf32, #tpu.memory_space<vmem>>, vector<1x8x64xf32>
    %11 = vector.shape_cast %10 : vector<1x8x64xf32> to vector<8x64xf32>
    %12 = vector.shape_cast %9 : vector<8x64xf32> to vector<1x8x64xf32>
    tpu.vector_store %arg3[%c1_10, %c0_11, %c0_12], %12 {strides = array<i32>} : memref<2x8x64xf32, #tpu.memory_space<vmem>>, vector<1x8x64xf32>,
    return
  }
  func.func @transform_0(%arg0: i32) -> (i32, i32, i32) {
    %c0_i32 = arith.constant 0 : i32
    %c0_i32_0 = arith.constant 0 : i32
    %c0_i32_1 = arith.constant 0 : i32
    return %arg0, %c0_i32, %c0_i32_0 : i32, i32, i32
  }
  func.func @transform_1(%arg0: i32) -> (i32, i32) {
    %c0_i32 = arith.constant 0 : i32
    %c0_i32_0 = arith.constant 0 : i32
    %c0_i32_1 = arith.constant 0 : i32
    return %c0_i32, %c0_i32_0 : i32, i32
  }
  func.func @transform_2(%arg0: i32) -> (i32, i32, i32) {
    %c0_i32 = arith.constant 0 : i32
    %c0_i32_0 = arith.constant 0 : i32
    %c0_i32_1 = arith.constant 0 : i32
    return %arg0, %c0_i32, %c0_i32_0 : i32, i32, i32
  }
}

</mosaic_0001>

<bundles_post_ra>
// kernel: downsample.1
= control target key start
LH: loop header
LB: loop body
LE: loop exit
PB: predicated region body
PF: predicated region fallthrough
CT: control target
= control target key end

     0   :  { %vm17_vm0 = vcmask 1043456   ;;  %v196_v0 = vmov 0.0   ;;  %vm13_vm1 = vcmask 31744   ;;  %vm197_vm2 = vmmov 0   ;;  %s228_s0 = inlined_call_operand.vmem [shape: f32[2,4,64], index: 0, kind: input, shape index: {}]   ;;  %s229_s1 = inlined_call_operand.vmem [shape: f32[8,4], index: 1, kind: input, shape index: {}]   ;;  %s230_s2 = inlined_call_operand.vmem [shape: f32[2,8,64], index: 2, kind: output, shape index: {}]  }
   0x1   :  { %184 = vmatprep.subr.mxu0 %v196_v0  ;;  %189 = vmatprep.subr.mxu1 %v196_v0  ;;  %v12_v1 = vld [vmem:[%s228_s0] sm:$0xf]  ;;  %v176_v2 = vld [vmem:[%s228_s0 + $0x4] sm:$0xf]  ;;  %vm91_vm3 = vcmask 523264  }
   0x2   :  { %v11_v3 = vld [vmem:[%s229_s1] sm:$0xff]  ;;  %185 = vmatpush3.msk.msra.mxu0 %vm17_vm0, %v12_v1  ;;  %186 = vmatprep.mubr.msk.f32.mxu0 %vm197_vm2, %v196_v0 }
   0x3   :  { %190 = vmatpush3.msk.msra.mxu1 %vm17_vm0, %v176_v2  ;;  %191 = vmatprep.mubr.msk.f32.mxu1 %vm197_vm2, %v196_v0 }
   0x4   :  { %187 = vmatmul.mubr.msk.f32.vlgmr.msra.gmra.mxu0 %vm13_vm1, %v11_v3  ;;  %192 = vmatmul.mubr.msk.f32.vlgmr.msra.gmra.mxu1 %vm13_vm1, %v11_v3 }
  0xc4   :  { %v87_v4 = vpop.f32.mrf.mxu0  ;;  %v164_v5 = vpop.f32.mrf.mxu1 }
  0xc5   :  { %92 = vst.msk [vmem:[%s230_s2] sm:$0xff] %vm91_vm3, %v87_v4  ;;  %179 = vst.msk [vmem:[%s230_s2 + $0x8] sm:$0xff] %vm91_vm3, %v164_v5 }
  0xc6   :  { %v188_v6 = vpop.f32.mrf.mxu0  ;;  %v193_v7 = vpop.f32.mrf.mxu1 }

</bundles_post_ra>
